<compile_context>
chip_gen: v7x
topology: tpu7x:2x2x1
jax: 0.10.0
libtpu: 0.0.40
codegen_flags: <defaults>
</compile_context>

<pallas_src>
import functools

import jax
import jax.numpy as jnp
from jax import lax
from jax.experimental import pallas as pl
from jax.experimental.pallas import tpu as pltpu


# --------------------------------------------------------------------------- #
# Fused Bottleneck kernel (one batch sample per grid step)
# --------------------------------------------------------------------------- #
def _bottleneck_kernel(*refs, ws, mode):
    """refs (mode == "downsample"):
        x_ref    (Cin,  HW)       bf16   flattened NCHW sample
        w1_ref   (Mid,  Cin)      bf16   conv1 1x1 (BN scale folded)
        b1_ref   (Mid,  1)        f32
        w2_ref   (9, Mid, Mid)    bf16   conv2 3x3 taps, tap t = kh*3+kw, (o,i)
        b2_ref   (Mid,  1)        f32
        w3_ref   (Cout, Mid)      bf16   conv3 1x1 (BN folded)
        b3_ref   (Cout, 1)        f32    (includes down-sample BN bias if fused)
        mask_ref (8,    HW)       bf16   0/1 boundary masks, non-center taps
        wd_ref   (Cout, Cin)      bf16   down-sample 1x1 (only in "downsample")
        o_ref    (Cout, HW)       bf16
    """
    if mode == "downsample":
        (x_ref, w1_ref, b1_ref, w2_ref, b2_ref, w3_ref, b3_ref,
         mask_ref, wd_ref, o_ref) = refs
    else:
        (x_ref, w1_ref, b1_ref, w2_ref, b2_ref, w3_ref, b3_ref,
         mask_ref, o_ref) = refs

    x = x_ref[...]                                              # (Cin, HW) bf16

    # ---- conv1: 1x1 + BN + ReLU; quantize to bf16 BEFORE the tap shifts ----
    y1 = jnp.dot(w1_ref[...], x, preferred_element_type=jnp.float32)
    y1b = jnp.maximum(y1 + b1_ref[...], 0.0).astype(jnp.bfloat16)  # (Mid, HW)

    # ---- conv2: 3x3 pad=1 as 9 accumulating per-tap MXU matmuls -------------
    # Tap t = (dh+1)*3 + (dw+1); its input column is roll(y1b, -(dh*ws+dw))
    # masked at the image boundary.  Bases roll(+-ws) are reused so only
    # 2 big rolls + 6 single-lane rolls are needed (all on packed bf16).
    up = jnp.roll(y1b, ws, axis=1)        # dh = -1 base
    dn = jnp.roll(y1b, -ws, axis=1)       # dh = +1 base
    cols = {
        0: jnp.roll(up, 1, axis=1),       # (dh,dw)=(-1,-1)
        1: up,                            # (-1, 0)
        2: jnp.roll(up, -1, axis=1),      # (-1,+1)
        3: jnp.roll(y1b, 1, axis=1),      # ( 0,-1)
        5: jnp.roll(y1b, -1, axis=1),     # ( 0,+1)
        6: jnp.roll(dn, 1, axis=1),       # (+1,-1)
        7: dn,                            # (+1, 0)
        8: jnp.roll(dn, -1, axis=1),      # (+1,+1)
    }
    masks = mask_ref[...]                                       # (8, HW) bf16

    # Center tap needs no mask; accumulate the 8 shifted taps into f32.
    acc = jnp.dot(w2_ref[4], y1b, preferred_element_type=jnp.float32)
    for t, col in cols.items():
        m = t if t < 4 else t - 1                               # mask row index
        col = col * masks[m:m + 1, :]                           # bf16 * 0/1
        acc = acc + jnp.dot(w2_ref[t], col,
                            preferred_element_type=jnp.float32)
    y2b = jnp.maximum(acc + b2_ref[...], 0.0).astype(jnp.bfloat16)  # (Mid, HW)

    # ---- conv3: 1x1 + BN (no act) + residual + final ReLU -------------------
    y3 = jnp.dot(w3_ref[...], y2b,
                 preferred_element_type=jnp.float32) + b3_ref[...]
    if mode == "identity":
        y3 = y3 + x.astype(jnp.float32)
    elif mode == "downsample":
        y3 = y3 + jnp.dot(wd_ref[...], x, preferred_element_type=jnp.float32)
    o_ref[...] = jnp.maximum(y3, 0.0).astype(o_ref.dtype)


# --------------------------------------------------------------------------- #
# Parameter folding (BN eval-mode folded into conv weight / bias)
# --------------------------------------------------------------------------- #
def _fold_conv_bn(w, gamma, beta, mean, var, eps):
    scale = gamma / jnp.sqrt(var + eps)
    w_f = (w * scale[:, None, None, None]).astype(jnp.bfloat16)
    bias = (beta - mean * scale).astype(jnp.float32)
    return w_f, bias


def _prepare(params, *, cin, cout, s, residual, eps):
    c1, c2, c3, cd = params["conv1"], params["conv2"], params["conv3"], params["down"]
    w1f, b1 = _fold_conv_bn(c1["w"], c1["gamma"], c1["beta"], c1["mean"], c1["var"], eps)
    w2f, b2 = _fold_conv_bn(c2["w"], c2["gamma"], c2["beta"], c2["mean"], c2["var"], eps)
    w3f, b3 = _fold_conv_bn(c3["w"], c3["gamma"], c3["beta"], c3["mean"], c3["var"], eps)
    if not residual:
        return w1f, b1, w2f, b2, w3f, b3, None, "none"
    if cin == cout and s == 1:
        return w1f, b1, w2f, b2, w3f, b3, None, "identity"
    wdf, bd = _fold_conv_bn(cd["w"], cd["gamma"], cd["beta"], cd["mean"], cd["var"], eps)
    return w1f, b1, w2f, b2, w3f, b3 + bd, wdf, "downsample"


# --------------------------------------------------------------------------- #
# Pallas wrapper
# --------------------------------------------------------------------------- #
def bottleneck_forward(x, params, *, s=1, residual=True, eps=1e-5):
    n, cin, _, _ = x.shape
    mid = params["conv1"]["w"].shape[0]
    cout = params["conv3"]["w"].shape[0]

    w1f, b1, w2f, b2, w3f, b_out, wdf, mode = _prepare(
        params, cin=cin, cout=cout, s=s, residual=residual, eps=eps)

    # A 1x1 conv with stride s (conv1 and down_sample, padding 0) only ever
    # reads the s-strided pixels, so apply the subsample once in glue.
    xs = x if s == 1 else x[:, :, ::s, ::s]
    _, _, hs, ws_ = xs.shape
    hw = hs * ws_

    # NCHW is already (C, H*W)-contiguous per sample: pure reshape, no
    # transpose.  Feed bf16 activations from the previous block to make the
    # astype a no-op (no extra HBM pass).
    x_flat = xs.reshape(n, cin, hw).astype(jnp.bfloat16)
    w1m = w1f.reshape(mid, cin)
    w2t = jnp.transpose(w2f, (2, 3, 0, 1)).reshape(9, mid, mid)   # (tap, o, i)
    w3m = w3f.reshape(cout, mid)
    b1m = b1.reshape(mid, 1)
    b2m = b2.reshape(mid, 1)
    b3m = b_out.reshape(cout, 1)

    # Precompute the 8 non-center tap boundary masks (bf16 0/1 rows).
    hh = jnp.arange(hw, dtype=jnp.int32) // ws_
    ww = jnp.arange(hw, dtype=jnp.int32) % ws_
    mrows = []
    for dh in (-1, 0, 1):
        for dw in (-1, 0, 1):
            if dh == 0 and dw == 0:
                continue
            valid = jnp.ones((hw,), dtype=bool)
            if dh < 0:
                valid = valid & (hh >= -dh)
            if dh > 0:
                valid = valid & (hh < hs - dh)
            if dw < 0:
                valid = valid & (ww >= -dw)
            if dw > 0:
                valid = valid & (ww < ws_ - dw)
            mrows.append(valid)
    masks = jnp.stack(mrows, axis=0).astype(jnp.bfloat16)         # (8, hw)

    operands = [x_flat, w1m, b1m, w2t, b2m, w3m, b3m, masks]
    in_specs = [
        pl.BlockSpec((None, cin, hw), lambda i: (i, 0, 0)),
        pl.BlockSpec((mid, cin), lambda i: (0, 0)),
        pl.BlockSpec((mid, 1), lambda i: (0, 0)),
        pl.BlockSpec((9, mid, mid), lambda i: (0, 0, 0)),
        pl.BlockSpec((mid, 1), lambda i: (0, 0)),
        pl.BlockSpec((cout, mid), lambda i: (0, 0)),
        pl.BlockSpec((cout, 1), lambda i: (0, 0)),
        pl.BlockSpec((8, hw), lambda i: (0, 0)),
    ]
    if mode == "downsample":
        operands.append(wdf.reshape(cout, cin))
        in_specs.append(pl.BlockSpec((cout, cin), lambda i: (0, 0)))

    kernel = functools.partial(_bottleneck_kernel, ws=ws_, mode=mode)

    out_flat = pl.pallas_call(
        kernel,
        out_shape=jax.ShapeDtypeStruct((n, cout, hw), jnp.bfloat16),
        grid_spec=pltpu.PrefetchScalarGridSpec(
            num_scalar_prefetch=0,
            grid=(n,),
            in_specs=in_specs,
            out_specs=pl.BlockSpec((None, cout, hw), lambda i: (i, 0, 0)),
        ),
        compiler_params=pltpu.CompilerParams(
            dimension_semantics=("parallel",),
            vmem_limit_bytes=48 * 1024 * 1024,
        ),
    )(*operands)

    return out_flat.reshape(n, cout, hs, ws_)


# --------------------------------------------------------------------------- #
# Pure-JAX reference (mirrors the kernel's bf16 operand quantization)
# --------------------------------------------------------------------------- #
def bottleneck_reference(x, params, *, s=1, residual=True, eps=1e-5):
    _, cin, _, _ = x.shape
    mid = params["conv1"]["w"].shape[0]
    cout = params["conv3"]["w"].shape[0]
    w1f, b1, w2f, b2, w3f, b_out, wdf, mode = _prepare(
        params, cin=cin, cout=cout, s=s, residual=residual, eps=eps)

    f32 = jnp.float32
    hi = lax.Precision.HIGHEST
    xs = x if s == 1 else x[:, :, ::s, ::s]
    xb = xs.astype(jnp.bfloat16).astype(f32)

    y1 = jnp.einsum("oc,nchw->nohw", w1f.reshape(mid, cin).astype(f32), xb,
                    precision=hi)
    y1 = jax.nn.relu(y1 + b1[None, :, None, None])
    y1 = y1.astype(jnp.bfloat16).astype(f32)

    y2 = lax.conv_general_dilated(y1, w2f.astype(f32), (1, 1), ((1, 1), (1, 1)),
                                  dimension_numbers=("NCHW", "OIHW", "NCHW"),
                                  precision=hi)
    y2 = jax.nn.relu(y2 + b2[None, :, None, None])
    y2 = y2.astype(jnp.bfloat16).astype(f32)

    y3 = jnp.einsum("om,nmhw->nohw", w3f.reshape(cout, mid).astype(f32), y2,
                    precision=hi) + b_out[None, :, None, None]
    if mode == "identity":
        y3 = y3 + xb
    elif mode == "downsample":
        y3 = y3 + jnp.einsum("oc,nchw->nohw", wdf.reshape(cout, cin).astype(f32),
                             xb, precision=hi)
    return jax.nn.relu(y3)


def _init_conv_bn(key, cout_, cin_, k):
    kw_, kg, kb, km, kv = jax.random.split(key, 5)
    return {
        "w": 0.2 * jax.random.normal(kw_, (cout_, cin_, k, k), dtype=jnp.float32),
        "gamma": 1.0 + 0.1 * jax.random.normal(kg, (cout_,), dtype=jnp.float32),
        "beta": 0.1 * jax.random.normal(kb, (cout_,), dtype=jnp.float32),
        "mean": 0.1 * jax.random.normal(km, (cout_,), dtype=jnp.float32),
        "var": jnp.abs(jax.random.normal(kv, (cout_,), dtype=jnp.float32)) + 0.5,
    }


if __name__ == "__main__":
    key = jax.random.PRNGKey(0)
    kx, k1, k2, k3, k4 = jax.random.split(key, 5)

    N, CIN, MID, COUT, H, W, S = 2, 4, 8, 16, 16, 16, 1

    x = jax.random.normal(kx, (N, CIN, H, W), dtype=jnp.float32)
    params = {
        "conv1": _init_conv_bn(k1, MID, CIN, 1),
        "conv2": _init_conv_bn(k2, MID, MID, 3),
        "conv3": _init_conv_bn(k3, COUT, MID, 1),
        "down": _init_conv_bn(k4, COUT, CIN, 1),   # used: CIN != COUT -> downsample path
    }

    out = bottleneck_forward(x, params, s=S, residual=True)
    out = jax.block_until_ready(out)

    ref = bottleneck_reference(x, params, s=S, residual=True)
    assert out.shape == (N, COUT, H, W), out.shape
    out_f32 = out.astype(jnp.float32)
    err = float(jnp.max(jnp.abs(out_f32 - ref)))
    # Output is bf16 by design (halved HBM writeback); tolerance covers the
    # final bf16 quantization on O(1) activations.
    assert jnp.allclose(out_f32, ref, atol=2e-2, rtol=2e-2), err

    print("KERNEL_OK")
</pallas_src>

<mosaic_0001>
module attributes {stable_mosaic.version = 11 : i64} {
  func.func @_bottleneck_kernel(%arg0: i32, %arg1: memref<1x4x256xbf16, #tpu.memory_space<vmem>>, %arg2: memref<8x4xbf16, #tpu.memory_space<vmem>>, %arg3: memref<8x1xf32, #tpu.memory_space<vmem>>, %arg4: memref<9x8x8xbf16, #tpu.memory_space<vmem>>, %arg5: memref<8x1xf32, #tpu.memory_space<vmem>>, %arg6: memref<16x8xbf16, #tpu.memory_space<vmem>>, %arg7: memref<16x1xf32, #tpu.memory_space<vmem>>, %arg8: memref<8x256xbf16, #tpu.memory_space<vmem>>, %arg9: memref<16x4xbf16, #tpu.memory_space<vmem>>, %arg10: memref<1x16x256xbf16, #tpu.memory_space<vmem>>) attributes {dimension_semantics = [#tpu.dimension_semantics<parallel>], iteration_bounds = array<i64: 2>, scalar_prefetch = 0 : i64, scratch_operands = 0 : i64, tpu.core_type = #tpu.core_type<tc>, window_params = [{transform_indices = @transform_0, window_bounds = array<i64: 1, 4, 256>}, {pipeline_mode = #tpu.pipeline_mode<synchronous>, transform_indices = @transform_1, window_bounds = array<i64: 8, 4>}, {pipeline_mode = #tpu.pipeline_mode<synchronous>, transform_indices = @transform_2, window_bounds = array<i64: 8, 1>}, {pipeline_mode = #tpu.pipeline_mode<synchronous>, transform_indices = @transform_3, window_bounds = array<i64: 9, 8, 8>}, {pipeline_mode = #tpu.pipeline_mode<synchronous>, transform_indices = @transform_4, window_bounds = array<i64: 8, 1>}, {pipeline_mode = #tpu.pipeline_mode<synchronous>, transform_indices = @transform_5, window_bounds = array<i64: 16, 8>}, {pipeline_mode = #tpu.pipeline_mode<synchronous>, transform_indices = @transform_6, window_bounds = array<i64: 16, 1>}, {pipeline_mode = #tpu.pipeline_mode<synchronous>, transform_indices = @transform_7, window_bounds = array<i64: 8, 256>}, {pipeline_mode = #tpu.pipeline_mode<synchronous>, transform_indices = @transform_8, window_bounds = array<i64: 16, 4>}, {transform_indices = @transform_9, window_bounds = array<i64: 1, 16, 256>}]} {
    %c0 = arith.constant 0 : index
    %c0_0 = arith.constant 0 : index
    %c0_1 = arith.constant 0 : index
    %0 = vector.load %arg1[%c0, %c0_0, %c0_1] : memref<1x4x256xbf16, #tpu.memory_space<vmem>>, vector<1x4x256xbf16>
    %1 = vector.shape_cast %0 : vector<1x4x256xbf16> to vector<4x256xbf16>
    %c0_2 = arith.constant 0 : index
    %c0_3 = arith.constant 0 : index
    %2 = vector.load %arg2[%c0_2, %c0_3] : memref<8x4xbf16, #tpu.memory_space<vmem>>, vector<8x4xbf16>
    %cst = arith.constant dense<0.000000e+00> : vector<8x256xf32>
    %3 = tpu.matmul %2, %1, %cst {dimension_numbers = #tpu.dot_dimension_numbers<[1], [0], [0], [1], [0, 0, 1, 1], [], []>} : vector<8x4xbf16>, vector<4x256xbf16>, vector<8x256xf32> -> vector<8x256xf32>
    %c0_4 = arith.constant 0 : index
    %c0_5 = arith.constant 0 : index
    %4 = vector.load %arg3[%c0_4, %c0_5] : memref<8x1xf32, #tpu.memory_space<vmem>>, vector<8x1xf32>
    %5 = vector.broadcast %4 : vector<8x1xf32> to vector<8x256xf32>
    %6 = arith.addf %3, %5 : vector<8x256xf32>
    %cst_6 = arith.constant 0.000000e+00 : f32
    %7 = vector.broadcast %cst_6 : f32 to vector<8x256xf32>
    %8 = arith.maximumf %6, %7 : vector<8x256xf32>
    %9 = arith.truncf %8 : vector<8x256xf32> to vector<8x256xbf16>
    %10 = vector.extract_strided_slice %9 {offsets = [0, 240], sizes = [8, 16], strides = [1, 1]} : vector<8x256xbf16> to vector<8x16xbf16>
    %11 = vector.extract_strided_slice %9 {offsets = [0, 0], sizes = [8, 240], strides = [1, 1]} : vector<8x256xbf16> to vector<8x240xbf16>
    %12 = tpu.concatenate %10, %11 in 1 : vector<8x16xbf16>, vector<8x240xbf16> -> vector<8x256xbf16>
    %13 = vector.extract_strided_slice %9 {offsets = [0, 16], sizes = [8, 240], strides = [1, 1]} : vector<8x256xbf16> to vector<8x240xbf16>
    %14 = vector.extract_strided_slice %9 {offsets = [0, 0], sizes = [8, 16], strides = [1, 1]} : vector<8x256xbf16> to vector<8x16xbf16>
    %15 = tpu.concatenate %13, %14 in 1 : vector<8x240xbf16>, vector<8x16xbf16> -> vector<8x256xbf16>
    %16 = vector.extract_strided_slice %12 {offsets = [0, 255], sizes = [8, 1], strides = [1, 1]} : vector<8x256xbf16> to vector<8x1xbf16>
    %17 = vector.extract_strided_slice %12 {offsets = [0, 0], sizes = [8, 255], strides = [1, 1]} : vector<8x256xbf16> to vector<8x255xbf16>
    %18 = tpu.concatenate %16, %17 in 1 : vector<8x1xbf16>, vector<8x255xbf16> -> vector<8x256xbf16>
    %19 = vector.extract_strided_slice %12 {offsets = [0, 1], sizes = [8, 255], strides = [1, 1]} : vector<8x256xbf16> to vector<8x255xbf16>
    %20 = vector.extract_strided_slice %12 {offsets = [0, 0], sizes = [8, 1], strides = [1, 1]} : vector<8x256xbf16> to vector<8x1xbf16>
    %21 = tpu.concatenate %19, %20 in 1 : vector<8x255xbf16>, vector<8x1xbf16> -> vector<8x256xbf16>
    %22 = vector.extract_strided_slice %9 {offsets = [0, 255], sizes = [8, 1], strides = [1, 1]} : vector<8x256xbf16> to vector<8x1xbf16>
    %23 = vector.extract_strided_slice %9 {offsets = [0, 0], sizes = [8, 255], strides = [1, 1]} : vector<8x256xbf16> to vector<8x255xbf16>
    %24 = tpu.concatenate %22, %23 in 1 : vector<8x1xbf16>, vector<8x255xbf16> -> vector<8x256xbf16>
    %25 = vector.extract_strided_slice %9 {offsets = [0, 1], sizes = [8, 255], strides = [1, 1]} : vector<8x256xbf16> to vector<8x255xbf16>
    %26 = vector.extract_strided_slice %9 {offsets = [0, 0], sizes = [8, 1], strides = [1, 1]} : vector<8x256xbf16> to vector<8x1xbf16>
    %27 = tpu.concatenate %25, %26 in 1 : vector<8x255xbf16>, vector<8x1xbf16> -> vector<8x256xbf16>
    %28 = vector.extract_strided_slice %15 {offsets = [0, 255], sizes = [8, 1], strides = [1, 1]} : vector<8x256xbf16> to vector<8x1xbf16>
    %29 = vector.extract_strided_slice %15 {offsets = [0, 0], sizes = [8, 255], strides = [1, 1]} : vector<8x256xbf16> to vector<8x255xbf16>
    %30 = tpu.concatenate %28, %29 in 1 : vector<8x1xbf16>, vector<8x255xbf16> -> vector<8x256xbf16>
    %31 = vector.extract_strided_slice %15 {offsets = [0, 1], sizes = [8, 255], strides = [1, 1]} : vector<8x256xbf16> to vector<8x255xbf16>
    %32 = vector.extract_strided_slice %15 {offsets = [0, 0], sizes = [8, 1], strides = [1, 1]} : vector<8x256xbf16> to vector<8x1xbf16>
    %33 = tpu.concatenate %31, %32 in 1 : vector<8x255xbf16>, vector<8x1xbf16> -> vector<8x256xbf16>
    %c0_7 = arith.constant 0 : index
    %c0_8 = arith.constant 0 : index
    %34 = vector.load %arg8[%c0_7, %c0_8] : memref<8x256xbf16, #tpu.memory_space<vmem>>, vector<8x256xbf16>
    %c4 = arith.constant 4 : index
    %c0_9 = arith.constant 0 : index
    %c0_10 = arith.constant 0 : index
    %35 = vector.load %arg4[%c4, %c0_9, %c0_10] : memref<9x8x8xbf16, #tpu.memory_space<vmem>>, vector<1x8x8xbf16>
    %36 = vector.shape_cast %35 : vector<1x8x8xbf16> to vector<8x8xbf16>
    %cst_11 = arith.constant dense<0.000000e+00> : vector<8x256xf32>
    %37 = tpu.matmul %36, %9, %cst_11 {dimension_numbers = #tpu.dot_dimension_numbers<[1], [0], [0], [1], [0, 0, 1, 1], [], []>} : vector<8x8xbf16>, vector<8x256xbf16>, vector<8x256xf32> -> vector<8x256xf32>
    %38 = vector.extract_strided_slice %34 {offsets = [0, 0], sizes = [1, 256], strides = [1, 1]} : vector<8x256xbf16> to vector<1x256xbf16>
    %39 = vector.broadcast %38 : vector<1x256xbf16> to vector<8x256xbf16>
    %40 = arith.mulf %18, %39 : vector<8x256xbf16>
    %c0_12 = arith.constant 0 : index
    %c0_13 = arith.constant 0 : index
    %c0_14 = arith.constant 0 : index
    %41 = vector.load %arg4[%c0_12, %c0_13, %c0_14] : memref<9x8x8xbf16, #tpu.memory_space<vmem>>, vector<1x8x8xbf16>
    %42 = vector.shape_cast %41 : vector<1x8x8xbf16> to vector<8x8xbf16>
    %cst_15 = arith.constant dense<0.000000e+00> : vector<8x256xf32>
    %43 = tpu.matmul %42, %40, %cst_15 {dimension_numbers = #tpu.dot_dimension_numbers<[1], [0], [0], [1], [0, 0, 1, 1], [], []>} : vector<8x8xbf16>, vector<8x256xbf16>, vector<8x256xf32> -> vector<8x256xf32>
    %44 = arith.addf %37, %43 : vector<8x256xf32>
    %45 = vector.extract_strided_slice %34 {offsets = [1, 0], sizes = [1, 256], strides = [1, 1]} : vector<8x256xbf16> to vector<1x256xbf16>
    %46 = vector.broadcast %45 : vector<1x256xbf16> to vector<8x256xbf16>
    %47 = arith.mulf %12, %46 : vector<8x256xbf16>
    %c1 = arith.constant 1 : index
    %c0_16 = arith.constant 0 : index
    %c0_17 = arith.constant 0 : index
    %48 = vector.load %arg4[%c1, %c0_16, %c0_17] : memref<9x8x8xbf16, #tpu.memory_space<vmem>>, vector<1x8x8xbf16>
    %49 = vector.shape_cast %48 : vector<1x8x8xbf16> to vector<8x8xbf16>
    %cst_18 = arith.constant dense<0.000000e+00> : vector<8x256xf32>
    %50 = tpu.matmul %49, %47, %cst_18 {dimension_numbers = #tpu.dot_dimension_numbers<[1], [0], [0], [1], [0, 0, 1, 1], [], []>} : vector<8x8xbf16>, vector<8x256xbf16>, vector<8x256xf32> -> vector<8x256xf32>
    %51 = arith.addf %44, %50 : vector<8x256xf32>
    %52 = vector.extract_strided_slice %34 {offsets = [2, 0], sizes = [1, 256], strides = [1, 1]} : vector<8x256xbf16> to vector<1x256xbf16>
    %53 = vector.broadcast %52 : vector<1x256xbf16> to vector<8x256xbf16>
    %54 = arith.mulf %21, %53 : vector<8x256xbf16>
    %c2 = arith.constant 2 : index
    %c0_19 = arith.constant 0 : index
    %c0_20 = arith.constant 0 : index
    %55 = vector.load %arg4[%c2, %c0_19, %c0_20] : memref<9x8x8xbf16, #tpu.memory_space<vmem>>, vector<1x8x8xbf16>
    %56 = vector.shape_cast %55 : vector<1x8x8xbf16> to vector<8x8xbf16>
    %cst_21 = arith.constant dense<0.000000e+00> : vector<8x256xf32>
    %57 = tpu.matmul %56, %54, %cst_21 {dimension_numbers = #tpu.dot_dimension_numbers<[1], [0], [0], [1], [0, 0, 1, 1], [], []>} : vector<8x8xbf16>, vector<8x256xbf16>, vector<8x256xf32> -> vector<8x256xf32>
    %58 = arith.addf %51, %57 : vector<8x256xf32>
    %59 = vector.extract_strided_slice %34 {offsets = [3, 0], sizes = [1, 256], strides = [1, 1]} : vector<8x256xbf16> to vector<1x256xbf16>
    %60 = vector.broadcast %59 : vector<1x256xbf16> to vector<8x256xbf16>
    %61 = arith.mulf %24, %60 : vector<8x256xbf16>
    %c3 = arith.constant 3 : index
    %c0_22 = arith.constant 0 : index
    %c0_23 = arith.constant 0 : index
    %62 = vector.load %arg4[%c3, %c0_22, %c0_23] : memref<9x8x8xbf16, #tpu.memory_space<vmem>>, vector<1x8x8xbf16>
    %63 = vector.shape_cast %62 : vector<1x8x8xbf16> to vector<8x8xbf16>
    %cst_24 = arith.constant dense<0.000000e+00> : vector<8x256xf32>
    %64 = tpu.matmul %63, %61, %cst_24 {dimension_numbers = #tpu.dot_dimension_numbers<[1], [0], [0], [1], [0, 0, 1, 1], [], []>} : vector<8x8xbf16>, vector<8x256xbf16>, vector<8x256xf32> -> vector<8x256xf32>
    %65 = arith.addf %58, %64 : vector<8x256xf32>
    %66 = vector.extract_strided_slice %34 {offsets = [4, 0], sizes = [1, 256], strides = [1, 1]} : vector<8x256xbf16> to vector<1x256xbf16>
    %67 = vector.broadcast %66 : vector<1x256xbf16> to vector<8x256xbf16>
    %68 = arith.mulf %27, %67 : vector<8x256xbf16>
    %c5 = arith.constant 5 : index
    %c0_25 = arith.constant 0 : index
    %c0_26 = arith.constant 0 : index
    %69 = vector.load %arg4[%c5, %c0_25, %c0_26] : memref<9x8x8xbf16, #tpu.memory_space<vmem>>, vector<1x8x8xbf16>
    %70 = vector.shape_cast %69 : vector<1x8x8xbf16> to vector<8x8xbf16>
    %cst_27 = arith.constant dense<0.000000e+00> : vector<8x256xf32>
    %71 = tpu.matmul %70, %68, %cst_27 {dimension_numbers = #tpu.dot_dimension_numbers<[1], [0], [0], [1], [0, 0, 1, 1], [], []>} : vector<8x8xbf16>, vector<8x256xbf16>, vector<8x256xf32> -> vector<8x256xf32>
    %72 = arith.addf %65, %71 : vector<8x256xf32>
    %73 = vector.extract_strided_slice %34 {offsets = [5, 0], sizes = [1, 256], strides = [1, 1]} : vector<8x256xbf16> to vector<1x256xbf16>
    %74 = vector.broadcast %73 : vector<1x256xbf16> to vector<8x256xbf16>
    %75 = arith.mulf %30, %74 : vector<8x256xbf16>
    %c6 = arith.constant 6 : index
    %c0_28 = arith.constant 0 : index
    %c0_29 = arith.constant 0 : index
    %76 = vector.load %arg4[%c6, %c0_28, %c0_29] : memref<9x8x8xbf16, #tpu.memory_space<vmem>>, vector<1x8x8xbf16>
    %77 = vector.shape_cast %76 : vector<1x8x8xbf16> to vector<8x8xbf16>
    %cst_30 = arith.constant dense<0.000000e+00> : vector<8x256xf32>
    %78 = tpu.matmul %77, %75, %cst_30 {dimension_numbers = #tpu.dot_dimension_numbers<[1], [0], [0], [1], [0, 0, 1, 1], [], []>} : vector<8x8xbf16>, vector<8x256xbf16>, vector<8x256xf32> -> vector<8x256xf32>
    %79 = arith.addf %72, %78 : vector<8x256xf32>
    %80 = vector.extract_strided_slice %34 {offsets = [6, 0], sizes = [1, 256], strides = [1, 1]} : vector<8x256xbf16> to vector<1x256xbf16>
    %81 = vector.broadcast %80 : vector<1x256xbf16> to vector<8x256xbf16>
    %82 = arith.mulf %15, %81 : vector<8x256xbf16>
    %c7 = arith.constant 7 : index
    %c0_31 = arith.constant 0 : index
    %c0_32 = arith.constant 0 : index
    %83 = vector.load %arg4[%c7, %c0_31, %c0_32] : memref<9x8x8xbf16, #tpu.memory_space<vmem>>, vector<1x8x8xbf16>
    %84 = vector.shape_cast %83 : vector<1x8x8xbf16> to vector<8x8xbf16>
    %cst_33 = arith.constant dense<0.000000e+00> : vector<8x256xf32>
    %85 = tpu.matmul %84, %82, %cst_33 {dimension_numbers = #tpu.dot_dimension_numbers<[1], [0], [0], [1], [0, 0, 1, 1], [], []>} : vector<8x8xbf16>, vector<8x256xbf16>, vector<8x256xf32> -> vector<8x256xf32>
    %86 = arith.addf %79, %85 : vector<8x256xf32>
    %87 = vector.extract_strided_slice %34 {offsets = [7, 0], sizes = [1, 256], strides = [1, 1]} : vector<8x256xbf16> to vector<1x256xbf16>
    %88 = vector.broadcast %87 : vector<1x256xbf16> to vector<8x256xbf16>
    %89 = arith.mulf %33, %88 : vector<8x256xbf16>
    %c8 = arith.constant 8 : index
    %c0_34 = arith.constant 0 : index
    %c0_35 = arith.constant 0 : index
    %90 = vector.load %arg4[%c8, %c0_34, %c0_35] : memref<9x8x8xbf16, #tpu.memory_space<vmem>>, vector<1x8x8xbf16>
    %91 = vector.shape_cast %90 : vector<1x8x8xbf16> to vector<8x8xbf16>
    %cst_36 = arith.constant dense<0.000000e+00> : vector<8x256xf32>
    %92 = tpu.matmul %91, %89, %cst_36 {dimension_numbers = #tpu.dot_dimension_numbers<[1], [0], [0], [1], [0, 0, 1, 1], [], []>} : vector<8x8xbf16>, vector<8x256xbf16>, vector<8x256xf32> -> vector<8x256xf32>
    %93 = arith.addf %86, %92 : vector<8x256xf32>
    %c0_37 = arith.constant 0 : index
    %c0_38 = arith.constant 0 : index
    %94 = vector.load %arg5[%c0_37, %c0_38] : memref<8x1xf32, #tpu.memory_space<vmem>>, vector<8x1xf32>
    %95 = vector.broadcast %94 : vector<8x1xf32> to vector<8x256xf32>
    %96 = arith.addf %93, %95 : vector<8x256xf32>
    %cst_39 = arith.constant 0.000000e+00 : f32
    %97 = vector.broadcast %cst_39 : f32 to vector<8x256xf32>
    %98 = arith.maximumf %96, %97 : vector<8x256xf32>
    %99 = arith.truncf %98 : vector<8x256xf32> to vector<8x256xbf16>
    %c0_40 = arith.constant 0 : index
    %c0_41 = arith.constant 0 : index
    %100 = vector.load %arg6[%c0_40, %c0_41] : memref<16x8xbf16, #tpu.memory_space<vmem>>, vector<16x8xbf16>
    %cst_42 = arith.constant dense<0.000000e+00> : vector<16x256xf32>
    %101 = tpu.matmul %100, %99, %cst_42 {dimension_numbers = #tpu.dot_dimension_numbers<[1], [0], [0], [1], [0, 0, 1, 1], [], []>} : vector<16x8xbf16>, vector<8x256xbf16>, vector<16x256xf32> -> vector<16x256xf32>
    %c0_43 = arith.constant 0 : index
    %c0_44 = arith.constant 0 : index
    %102 = vector.load %arg7[%c0_43, %c0_44] : memref<16x1xf32, #tpu.memory_space<vmem>>, vector<16x1xf32>
    %103 = vector.broadcast %102 : vector<16x1xf32> to vector<16x256xf32>
    %104 = arith.addf %101, %103 : vector<16x256xf32>
    %c0_45 = arith.constant 0 : index
    %c0_46 = arith.constant 0 : index
    %105 = vector.load %arg9[%c0_45, %c0_46] : memref<16x4xbf16, #tpu.memory_space<vmem>>, vector<16x4xbf16>
    %cst_47 = arith.constant dense<0.000000e+00> : vector<16x256xf32>
    %106 = tpu.matmul %105, %1, %cst_47 {dimension_numbers = #tpu.dot_dimension_numbers<[1], [0], [0], [1], [0, 0, 1, 1], [], []>} : vector<16x4xbf16>, vector<4x256xbf16>, vector<16x256xf32> -> vector<16x256xf32>
    %107 = arith.addf %104, %106 : vector<16x256xf32>
    %cst_48 = arith.constant 0.000000e+00 : f32
    %108 = vector.broadcast %cst_48 : f32 to vector<16x256xf32>
    %109 = arith.maximumf %107, %108 : vector<16x256xf32>
    %110 = arith.truncf %109 : vector<16x256xf32> to vector<16x256xbf16>
    %c0_49 = arith.constant 0 : index
    %c0_50 = arith.constant 0 : index
    %c0_51 = arith.constant 0 : index
    %111 = vector.load %arg10[%c0_49, %c0_50, %c0_51] : memref<1x16x256xbf16, #tpu.memory_space<vmem>>, vector<1x16x256xbf16>
    %112 = vector.shape_cast %111 : vector<1x16x256xbf16> to vector<16x256xbf16>
    %113 = vector.shape_cast %110 : vector<16x256xbf16> to vector<1x16x256xbf16>
    tpu.vector_store %arg10[%c0_49, %c0_50, %c0_51], %113 {strides = array<i32>} : memref<1x16x256xbf16, #tpu.memory_space<vmem>>, vector<1x16x256xbf16>,
    return
  }
  func.func @transform_0(%arg0: i32) -> (i32, i32, i32) {
    %c0_i32 = arith.constant 0 : i32
    %c0_i32_0 = arith.constant 0 : i32
    %c0_i32_1 = arith.constant 0 : i32
    return %arg0, %c0_i32, %c0_i32_0 : i32, i32, i32
  }
  func.func @transform_1(%arg0: i32) -> (i32, i32) {
    %c0_i32 = arith.constant 0 : i32
    %c0_i32_0 = arith.constant 0 : i32
    %c0_i32_1 = arith.constant 0 : i32
    return %c0_i32, %c0_i32_0 : i32, i32
  }
  func.func @transform_2(%arg0: i32) -> (i32, i32) {
    %c0_i32 = arith.constant 0 : i32
    %c0_i32_0 = arith.constant 0 : i32
    %c0_i32_1 = arith.constant 0 : i32
    return %c0_i32, %c0_i32_0 : i32, i32
  }
  func.func @transform_3(%arg0: i32) -> (i32, i32, i32) {
    %c0_i32 = arith.constant 0 : i32
    %c0_i32_0 = arith.constant 0 : i32
    %c0_i32_1 = arith.constant 0 : i32
    %c0_i32_2 = arith.constant 0 : i32
    return %c0_i32, %c0_i32_0, %c0_i32_1 : i32, i32, i32
  }
  func.func @transform_4(%arg0: i32) -> (i32, i32) {
    %c0_i32 = arith.constant 0 : i32
    %c0_i32_0 = arith.constant 0 : i32
    %c0_i32_1 = arith.constant 0 : i32
    return %c0_i32, %c0_i32_0 : i32, i32
  }
  func.func @transform_5(%arg0: i32) -> (i32, i32) {
    %c0_i32 = arith.constant 0 : i32
    %c0_i32_0 = arith.constant 0 : i32
    %c0_i32_1 = arith.constant 0 : i32
    return %c0_i32, %c0_i32_0 : i32, i32
  }
  func.func @transform_6(%arg0: i32) -> (i32, i32) {
    %c0_i32 = arith.constant 0 : i32
    %c0_i32_0 = arith.constant 0 : i32
    %c0_i32_1 = arith.constant 0 : i32
    return %c0_i32, %c0_i32_0 : i32, i32
  }
  func.func @transform_7(%arg0: i32) -> (i32, i32) {
    %c0_i32 = arith.constant 0 : i32
    %c0_i32_0 = arith.constant 0 : i32
    %c0_i32_1 = arith.constant 0 : i32
    return %c0_i32, %c0_i32_0 : i32, i32
  }
  func.func @transform_8(%arg0: i32) -> (i32, i32) {
    %c0_i32 = arith.constant 0 : i32
    %c0_i32_0 = arith.constant 0 : i32
    %c0_i32_1 = arith.constant 0 : i32
    return %c0_i32, %c0_i32_0 : i32, i32
  }
  func.func @transform_9(%arg0: i32) -> (i32, i32, i32) {
    %c0_i32 = arith.constant 0 : i32
    %c0_i32_0 = arith.constant 0 : i32
    %c0_i32_1 = arith.constant 0 : i32
    return %arg0, %c0_i32, %c0_i32_0 : i32, i32, i32
  }
}

</mosaic_0001>

<bundles_post_ra>
// kernel: tpu_custom_call.1
= control target key start
LH: loop header
LB: loop body
LE: loop exit
PB: predicated region body
PF: predicated region fallthrough
CT: control target
= control target key end

     0   :  { %14 = vsyncpa [#allocation3], 0  ;;  %s1812_s0 = inlined_call_operand.vmem [shape: bf16[2,4,256], index: 0, kind: input, shape index: {}]   ;;  %s1813_s1 = inlined_call_operand.vmem [shape: bf16[8,4], index: 1, kind: input, shape index: {}]   ;;  %s1814_s2 = inlined_call_operand.vmem [shape: f32[8,1], index: 2, kind: input, shape index: {}]   ;;  %s1815_s3 = inlined_call_operand.vmem [shape: bf16[9,8,8], index: 3, kind: input, shape index: {}]   ;;  %s1816_s4 = inlined_call_operand.vmem [shape: f32[8,1], index: 4, kind: input, shape index: {}]   ;;  %s1817_s5 = inlined_call_operand.vmem [shape: bf16[16,8], index: 5, kind: input, shape index: {}]   ;;  %s1818_s6 = inlined_call_operand.vmem [shape: f32[16,1], index: 6, kind: input, shape index: {}]   ;;  %s1819_s7 = inlined_call_operand.vmem [shape: bf16[8,256], index: 7, kind: input, shape index: {}]   ;;  %s1820_s8 = inlined_call_operand.vmem [shape: bf16[16,4], index: 8, kind: input, shape index: {}]   ;;  %s1821_s9 = inlined_call_operand.hbm [shape: bf16[2,16,256], index: 9, kind: output, shape index: {}]  }
   0x1   :  { %16 = vsyncpa [#allocation3 + $0x1], 0  ;;  %s1549_s30 = smov 0   ;;  %s1551_s10 = smov 0  }
   0x2   :  { %s1553_s11 = smov 0   ;;  %s1555_s12 = smov 0  }
   0x3 LB: > { %s1570_s13 = sadd.s32 4294967295, %s1489_s12   ;;  %s1312_s14 = sadd.s32 4294967294, %s1489_s12   ;;  %s1489_s12 = sphi %s1555_s12, %s1827_s12   ;;  %s1485_s11 = sphi %s1553_s11, %s1826_s11   ;;  %s1481_s10 = sphi %s1551_s10, %s1825_s10   ;;  %s1477_s30 = sphi %s1549_s30, %s1824_s30  }
   0x4   : > { %s1574_s15 = sadd.s32 1, %s1489_s12   ;;  %s223_s16 = sadd.s32 1, %s1485_s11 }
   0x5   : > { %s220_s17 = ssub.s32 %s1489_s12, %s1574_s15  ;;  %p233_p0 = scmp.ne.s32.totalorder %s1485_s11, %s1481_s10 }
   0x6   : > { %p221_p1 = scmp.eq.s32.totalorder %s220_s17, 0  ;;  %p234_p2 = scmp.eq.s32.totalorder %s1570_s13, 1 }
   0x7   : > { %p239_p3 = scmp.ne.s32.totalorder %s1481_s10, %s1477_s30  ;;  %p240_p4 = scmp.eq.s32.totalorder %s1312_s14, 1 }
   0x8   : > { %s1585_s18 = scalar_select %p221_p1, %s1485_s11, %s223_s16  }
   0x9   : > { %p1587_p5 = por %p234_p2, %p233_p0  ;;  %p1591_p6 = por %p240_p4, %p239_p3 }
   0xa   : > { %p1315_p7 = scmp.ge.s32.totalorder %s1489_s12, 1  ;;  %p290_p8 = scmp.lt.s32.totalorder %s1489_s12, 3 }
   0xc   : > { %p291_p9 = pnand %p1315_p7, %p290_p8 }
   0xd   : > { %p326_p10 = scmp.lt.s32.totalorder (!%p291_p9), %s1570_s13, 1  ;;  %v1491_v0 = vmov (!%p291_p9), 0   ;;  %v334_v1 = vld [vmem:[%s1814_s2] sm:$0xff] (!%p291_p9)  ;;  %vm353_vm0 = vcmask (!%p291_p9), 1041408   ;;  %vm349_vm1 = vcmask (!%p291_p9), 31744   ;;  %vm526_vm2 = vcmask (!%p291_p9), 1043456  }
   0xe   : > { %294 = sbr.rel (%p291_p9) target bundleno = 994 (0x3e2), region = 56  ;;  %392 = vmatprep.mubr.bf16.mxu1 (!%p291_p9), %v1491_v0  ;;  %1421 = vset.pattern.permute.xlu0 (!%p291_p9), %v1491_v0  ;;  %v333_v5 = vld [vmem:[%s1813_s1] sm:$0xf] (!%p291_p9)  ;;  %s1492_s14 = smov (!%p291_p9), 16   ;;  %v1322_v18 = vld [vmem:[%s1815_s3 + $0x10] sm:$0xf] (!%p291_p9)  ;;  %v508_v31 = vlaneseq (!%p291_p9) }
   0xf   : > { %337 = vperm.xlu0 (!%p291_p9), %1421, %v334_v1   ;;  %615 = vmatprep.mubr.bf16.mxu0 (!%p291_p9), %v1491_v0  ;;  %s1493_s16 = smov (!%p291_p9), 112   ;;  %vm522_vm3 = vcmask (!%p291_p9), 64512   ;;  %vm411_vm4 = vcmask (!%p291_p9), 130048   ;;  %s1494_s22 = smov (!%p291_p9), 1   ;;  %vm423_vm5 = vcmask (!%p291_p9), 916480   ;;  %v1092_v27 = vld [vmem:[%s1818_s6] sm:$0xff] (!%p291_p9) }
  0x10   : > { %1422 = vset.pattern.permute.xlu1 (!%p291_p9), %v1491_v0  ;;  %v1078_v28 = vld [vmem:[%s1816_s4] sm:$0xff] (!%p291_p9)  ;;  %v1093_v29 = vld [vmem:[%s1818_s6 + $0x8] sm:$0xff] (!%p291_p9)  ;;  %v509_v34 = vshrl.u32 (!%p291_p9), %v508_v31, 7  ;;  %vm436_vm6 = vcmask (!%p291_p9), 7168   ;;  %vm448_vm7 = vcmask (!%p291_p9), 1039360   ;;  %s323_s28 = sand.u32 (!%p291_p9), 1, %s1481_s10  }
  0x11   : > { %v497_v30 = vld [vmem:[%s1819_s7] sm:$0xff] (!%p291_p9)  ;;  %s1316_s29 = sshll.u32 (!%p291_p9), %s323_s28, 4  ;;  %s1366_s17 = sshll.u32 (!%p291_p9), %s1570_s13, 8 }
  0x12   : > { %v1323_v32 = vcombine.low (!%p291_p9), %v497_v30, %v497_v30  ;;  %v1324_v33 = vcombine.high (!%p291_p9), %v497_v30, %v497_v30  ;;  %v510_v37 = vsub.s32 (!%p291_p9), 0, %v509_v34  ;;  %v696_v44 = vsub.s32 (!%p291_p9), 1, %v509_v34  ;;  %v521_v62 = vld [vmem:[%s1815_s3] sm:$0xf] (!%p291_p9) }
  0x14   : > { %v624_v35 = vshrl.u32 (!%p291_p9), %v1323_v32, 16  ;;  %v631_v36 = vshrl.u32 (!%p291_p9), %v1324_v33, 16  ;;  %v1653_v40 = vpack.i.b16 (!%p291_p9), %v1324_v33, %v1324_v33  ;;  %v1655_v41 = vpack.i.b16 (!%p291_p9), %v1323_v32, %v1323_v32 }
  0x15   : > { %s327_s23 = scalar_select %p326_p10, %s1570_s13, 1 }
  0x16   : > { %v1649_v38 = vpack.i.b16 %v624_v35, %v624_v35  ;;  %v1651_v39 = vpack.i.b16 %v631_v36, %v631_v36  ;;  %v511_v42 = vrot.slane %v1655_v41, %v510_v37  ;;  %v518_v43 = vrot.slane %v1653_v40, %v510_v37  ;;  %s1496_s13 = smov [#allocation2]  }
  0x17   : > { %s1363_s24 = sshll.u32 %s327_s23, 2  ;;  %s1495_s23 = smov 127   ;;  %v697_v53 = vrot.slane %v1655_v41, %v696_v44  ;;  %v701_v54 = vrot.slane %v1653_v40, %v696_v44 }
  0x18   : > { %s330_s27 = scalar_lea.vmem %s1812_s0, %s1363_s24  ;;  %v630_v45 = vrot.slane %v1649_v38, %v510_v37  ;;  %v637_v46 = vrot.slane %v1651_v39, %v510_v37  ;;  %s1771_s24 = scalar_lea.sflag [#allocation3], %s323_s28 }
  0x19   : > { %v1319_v2 = vld.sshfl [vmem:[%s330_s27] sm:$0x33 pattern:$0x76325410]  ;;  %s1431_s26 = sshll.u32 %s1496_s13, 4  ;;  %s1432_s26 = int_to_ptr.vmem [resolvable:$false] %s1431_s26 }
  0x1a   : > { %v1609_v3 = vcombine.high %v1319_v2, %v1319_v2  ;;  %v1612_v4 = vsel %vm353_vm0, %v1319_v2, 0  ;;  %v765_v2 = vrot.slane %v1651_v39, %v696_v44  ;;  %s1433_s27 = scalar_lea.vmem %s1432_s26, 512 }
  0x1c   : > { %1320 = vmatprep.subr.msk.bf16.mxu1 %vm353_vm0, %v1609_v3 }
  0x1d   : > { %361 = vmatpush1.bf16.msra.mxu1 %v1612_v4 }
  0x20   : > { %1321 = vmatmul.mubr.msk.bf16.vlgmr.msra.gmra.mrb[0].mxu1 %vm349_vm1, %v333_v5  ;;  %v824_v5 = vsub.s32 2, %v509_v34 }
  0x21   : > { %565 = vmatprep.mubr.bf16.mxu1 %v1491_v0 }
  0x22   : > { %v893_v30 = vrot.slane %v1651_v39, %v824_v5  ;;  %v889_v31 = vrot.slane %v1649_v38, %v824_v5 }
  0x8e   : > { %v338_v6 = vpop.permute.xlu0 %337 }
  0xf3   : > { %v394_v7 = vpop.f32.mrb[0].mxu1 }
  0xf4   : > { %v395_v8 = vadd.f32 %v394_v7, %v338_v6  ;;  %v396_v9 = vpop.f32.mrb[1].mxu1 }
  0xf5   : > { %v397_v10 = vadd.f32 %v396_v9, %v338_v6  ;;  %v398_v11 = vpop.f32.mrb[2].mxu1  ;;  %v1674_v6 = vsub.s32 3, %v509_v34 }
  0xf6   : > { %v401_v12 = vmax.f32 %v395_v8, 0.0  ;;  %v399_v13 = vpop.f32.mrb[3].mxu1  ;;  %v761_v8 = vrot.slane %v1649_v38, %v696_v44 }
  0xf7   : > { %v402_v14 = vmax.f32 %v397_v10, 0.0 }
  0xf8   : > { %v403_v15 = vpack.c.bf16 %v401_v12, %v401_v12 }
  0xf9   : > { %v404_v16 = vpack.c.bf16 %v402_v14, %v402_v14  ;;  %v1332_v14 = vld [vmem:[%s1815_s3 + $0x8] sm:$0xf] }
  0xfa   : > { %409 = vrot.lane.b32.xlu1 %v403_v15, %s1492_s14  ;;  %v578_v17 = vsel %vm526_vm2, %v403_v15, 0 }
  0xfb   : > { %406 = vrot.lane.b32.xlu0 %v404_v16, %s1492_s14  ;;  %1327 = vmatprep.subr.msk.bf16.mxu0 %vm526_vm2, %v404_v16  ;;  %s325_s14 = scalar_lea.vmem [#allocation2], %s1316_s29 }
  0xfc   : > { %584 = vmatpush1.bf16.msra.mxu0 %v578_v17  ;;  %v829_v17 = vrot.slane %v1653_v40, %v824_v5 }
  0xfe   : > { %419 = vrot.lane.b32.xlu1 %v403_v15, %s1493_s16 }
  0xff   : > { %421 = vrot.lane.b32.xlu0 %v404_v16, %s1493_s16  ;;  %1328 = vmatmul.mubr.msk.bf16.vlgmr.msra.gmra.mrb[0].mxu0 %vm522_vm3, %v1322_v18  ;;  %v957_v18 = vrot.slane %v1653_v40, %v1674_v6  ;;  %s1250_s16 = sshll.u32 %s325_s14, 4  ;;  %s1764_s16 = int_to_ptr.vmem [resolvable:$true] %s1250_s16 }
 0x100   : > { %747 = vmatprep.mubr.bf16.mxu0 %v1491_v0  ;;  %s1427_s25 = scalar_lea.vmem %s1764_s16, 256  ;;  %p1434_p0 = scmp.lt.s32.totalorder %s1764_s16, %s1432_s26 }
 0x101   : > { %p1428_p11 = scmp.ne.s32.totalorder %s1764_s16, %s1427_s25  ;;  %p1435_p1 = scmp.lt.s32.totalorder %s1433_s27, %s1427_s25 }
 0x103   : > { %p1429_p12 = pnand %p1428_p11, %p1587_p5  ;;  %p1436_p2 = por %p1435_p1, %p1434_p0 }
 0x105   : > { %p1430_p13 = pneg %p1429_p12 }
 0x107   : > { %p1437_p3 = pnand %p1436_p2, %p1430_p13 }
 0x16c   : > { %v410_v19 = vpop.permute.xlu1 %409 }
 0x16d   : > { %v407_v20 = vpop.permute.xlu0 %406 }
 0x16e   : > { %v417_v21 = vsel %vm411_vm4, %v407_v20, %v410_v19  ;;  %v412_v22 = vsel %vm411_vm4, %v410_v19, %v407_v20  ;;  %v953_v19 = vrot.slane %v1655_v41, %v1674_v6 }
 0x16f   : > { %434 = vrot.lane.b32.xlu0 %v417_v21, %s1494_s22  ;;  %431 = vrot.lane.b32.xlu1 %v412_v22, %s1494_s22  ;;  %v638_v55 = vmul.bf16 %v630_v45, %v417_v21  ;;  %v639_v56 = vmul.bf16 %v637_v46, %v412_v22 }
 0x170   : > { %v420_v23 = vpop.permute.xlu1 %419 }
 0x171   : > { %v422_v24 = vpop.permute.xlu0 %421  ;;  %v646_v10 = vsel %vm526_vm2, %v638_v55, 0  ;;  %v1347_v55 = vld [vmem:[%s1815_s3 + $0x20] sm:$0xf] }
 0x172   : > { %v1629_v25 = vsel %vm423_vm5, %v422_v24, %v420_v23  ;;  %v1631_v26 = vsel %vm423_vm5, %v420_v23, %v422_v24 }
 0x173   : > { %446 = vrot.lane.b32.xlu0 %v412_v22, %s1495_s23  ;;  %444 = vrot.lane.b32.xlu1 %v417_v21, %s1495_s23  ;;  %v959_v32 = vmul.bf16 %v957_v18, %v1629_v25  ;;  %v958_v33 = vmul.bf16 %v953_v19, %v1631_v26 }
 0x175   : > { %v966_v46 = vsel %vm526_vm2, %v958_v33, 0 }
 0x177   : > { %458 = vrot.lane.b32.xlu0 %v403_v15, %s1494_s22  ;;  %456 = vrot.lane.b32.xlu1 %v404_v16, %s1494_s22 }
 0x17b   : > { %468 = vrot.lane.b32.xlu0 %v404_v16, %s1495_s23  ;;  %466 = vrot.lane.b32.xlu1 %v403_v15, %s1495_s23  ;;  %v825_v16 = vrot.slane %v1655_v41, %v824_v5 }
 0x17f   : > { %477 = vrot.lane.b32.xlu1 %v1629_v25, %s1494_s22  ;;  %479 = vrot.lane.b32.xlu0 %v1631_v26, %s1494_s22 }
 0x183   : > { %487 = vrot.lane.b32.xlu1 %v1631_v26, %s1495_s23  ;;  %489 = vrot.lane.b32.xlu0 %v1629_v25, %s1495_s23  ;;  %v1338_v25 = vld [vmem:[%s1815_s3 + $0x14] sm:$0xf]  ;;  %s1769_s23 = scalar_lea.hbm %s1821_s9, %s1366_s17 }
 0x187   : > { %1096 = vperm.xlu0 %1421, %v1092_v27   ;;  %1081 = vperm.xlu1 %1422, %v1078_v28   ;;  %v1329_v27 = vld [vmem:[%s1815_s3 + $0x4] sm:$0xf] }
 0x18b   : > { %1101 = vperm.xlu1 %1422, %v1093_v29  }
 0x1e1   : > { %v435_v47 = vpop.permute.xlu0 %434  ;;  %v432_v48 = vpop.permute.xlu1 %431 }
 0x1e2   : > { %v437_v49 = vsel %vm436_vm6, %v435_v47, %v432_v48  ;;  %v442_v50 = vsel %vm436_vm6, %v432_v48, %v435_v47  ;;  %v1335_v48 = vld [vmem:[%s1815_s3 + $0xc] sm:$0xf] }
 0x1e3   : > { %v519_v51 = vmul.bf16 %v511_v42, %v442_v50  ;;  %v520_v52 = vmul.bf16 %v518_v43, %v437_v49  ;;  %v1021_v42 = vrot.slane %v1651_v39, %v1674_v6  ;;  %v1017_v49 = vrot.slane %v1649_v38, %v1674_v6  ;;  %v1341_v38 = vld [vmem:[%s1815_s3 + $0x18] sm:$0xf] }
 0x1e5   : > { %v447_v57 = vpop.permute.xlu0 %446  ;;  %1325 = vmatprep.subr.msk.bf16.mxu1 %vm526_vm2, %v520_v52  ;;  %v445_v58 = vpop.permute.xlu1 %444  ;;  %v528_v59 = vsel %vm526_vm2, %v519_v51, 0  ;;  %v1344_v52 = vld [vmem:[%s1815_s3 + $0x1c] sm:$0xf] }
 0x1e6   : > { %v449_v60 = vsel %vm448_vm7, %v445_v58, %v447_v57  ;;  %v454_v61 = vsel %vm448_vm7, %v447_v57, %v445_v58  ;;  %534 = vmatpush1.bf16.msra.mxu1 %v528_v59 }
 0x1e7   : > { %v702_v63 = vmul.bf16 %v697_v53, %v449_v60  ;;  %v703_v1 = vmul.bf16 %v701_v54, %v454_v61  ;;  %1330 = vmatprep.subr.msk.bf16.mxu1 %vm526_vm2, %v639_v56  ;;  %v617_v56 = vpop.f32.mrb[0].mxu0 }
 0x1e8   : > { %v619_v57 = vpop.f32.mrb[1].mxu0 }
 0x1e9   : > { %v459_v7 = vpop.permute.xlu0 %458  ;;  %1326 = vmatmul.mubr.msk.bf16.vlgmr.msra.gmra.mrb[4].mxu1 %vm522_vm3, %v521_v62  ;;  %v457_v9 = vpop.permute.xlu1 %456  ;;  %1333 = vmatprep.subr.msk.bf16.mxu0 %vm526_vm2, %v703_v1  ;;  %v710_v11 = vsel %vm526_vm2, %v702_v63, 0 }
 0x1ea   : > { %v460_v12 = vsel %vm436_vm6, %v459_v7, %v457_v9  ;;  %v464_v13 = vsel %vm436_vm6, %v457_v9, %v459_v7  ;;  %652 = vmatpush1.bf16.msra.mxu1 %v646_v10  ;;  %716 = vmatpush1.bf16.msra.mxu0 %v710_v11  ;;  %v621_v58 = vpop.f32.mrb[2].mxu0 }
 0x1eb   : > { %v767_v15 = vmul.bf16 %v765_v2, %v460_v12  ;;  %683 = vmatprep.mubr.bf16.mxu1 %v1491_v0  ;;  %v766_v20 = vmul.bf16 %v761_v8, %v464_v13  ;;  %v622_v59 = vpop.f32.mrb[3].mxu0 }
 0x1ed   : > { %v469_v21 = vpop.permute.xlu0 %468  ;;  %1336 = vmatprep.subr.msk.bf16.mxu1 %vm526_vm2, %v767_v15  ;;  %v467_v22 = vpop.permute.xlu1 %466  ;;  %1334 = vmatmul.mubr.msk.bf16.vlgmr.msra.gmra.mrb[4].mxu0 %vm522_vm3, %v1332_v14  ;;  %v774_v35 = vsel %vm526_vm2, %v766_v20, 0 }
 0x1ee   : > { %v470_v23 = vsel %vm448_vm7, %v467_v22, %v469_v21  ;;  %v474_v24 = vsel %vm448_vm7, %v469_v21, %v467_v22  ;;  %875 = vmatprep.mubr.bf16.mxu0 %v1491_v0 }
 0x1ef   : > { %v830_v28 = vmul.bf16 %v825_v16, %v470_v23  ;;  %v831_v29 = vmul.bf16 %v829_v17, %v474_v24 }
 0x1f1   : > { %v480_v34 = vpop.permute.xlu0 %479  ;;  %1331 = vmatmul.mubr.msk.bf16.vlgmr.msra.gmra.mrb[8].mxu1 %vm522_vm3, %v1329_v27  ;;  %v478_v36 = vpop.permute.xlu1 %477  ;;  %1339 = vmatprep.subr.msk.bf16.mxu0 %vm526_vm2, %v831_v29  ;;  %v838_v37 = vsel %vm526_vm2, %v830_v28, 0 }
 0x1f2   : > { %780 = vmatpush1.bf16.msra.mxu1 %v774_v35  ;;  %v481_v40 = vsel %vm436_vm6, %v480_v34, %v478_v36  ;;  %v485_v41 = vsel %vm436_vm6, %v478_v36, %v480_v34  ;;  %844 = vmatpush1.bf16.msra.mxu0 %v838_v37 }
 0x1f3   : > { %v895_v26 = vmul.bf16 %v893_v30, %v481_v40  ;;  %1345 = vmatprep.subr.msk.bf16.mxu0 %vm526_vm2, %v959_v32  ;;  %811 = vmatprep.mubr.bf16.mxu1 %v1491_v0  ;;  %v894_v43 = vmul.bf16 %v889_v31, %v485_v41 }
 0x1f5   : > { %v490_v44 = vpop.permute.xlu0 %489  ;;  %1342 = vmatprep.subr.msk.bf16.mxu1 %vm526_vm2, %v895_v26  ;;  %v488_v45 = vpop.permute.xlu1 %487  ;;  %1340 = vmatmul.mubr.msk.bf16.vlgmr.msra.gmra.mrb[8].mxu0 %vm522_vm3, %v1338_v25  ;;  %v902_v50 = vsel %vm526_vm2, %v894_v43, 0 }
 0x1f6   : > { %v495_v47 = vsel %vm448_vm7, %v490_v44, %v488_v45  ;;  %972 = vmatpush1.bf16.msra.mxu0 %v966_v46  ;;  %1003 = vmatprep.mubr.bf16.mxu0 %v1491_v0  ;;  %v491_v51 = vsel %vm448_vm7, %v488_v45, %v490_v44 }
 0x1f7   : > { %v1023_v39 = vmul.bf16 %v1021_v42, %v495_v47  ;;  %v1022_v53 = vmul.bf16 %v1017_v49, %v491_v51 }
 0x1f9   : > { %1337 = vmatmul.mubr.msk.bf16.vlgmr.msra.gmra.mrb[12].mxu1 %vm522_vm3, %v1335_v48  ;;  %v1030_v54 = vsel %vm526_vm2, %v1022_v53, 0 }
 0x1fa   : > { %908 = vmatpush1.bf16.msra.mxu1 %v902_v50  ;;  %939 = vmatprep.mubr.bf16.mxu1 %v1491_v0 }
 0x1fb   : > { %1348 = vmatprep.subr.msk.bf16.mxu1 %vm526_vm2, %v1023_v39 }
 0x1fd   : > { %1346 = vmatmul.mubr.msk.bf16.vlgmr.msra.gmra.mrb[12].mxu0 %vm522_vm3, %v1344_v52 }
 0x1fe   : > { %1150 = vmatprep.mubr.bf16.mxu0 %v1491_v0 }
 0x201   : > { %1343 = vmatmul.mubr.msk.bf16.vlgmr.msra.gmra.mrb[16].mxu1 %vm522_vm3, %v1341_v38 }
 0x202   : > { %1036 = vmatpush1.bf16.msra.mxu1 %v1030_v54  ;;  %1067 = vmatprep.mubr.bf16.mxu1 %v1491_v0 }
 0x206   : > { %v1082_v46 = vpop.permute.xlu1 %1081 }
 0x209   : > { %1349 = vmatmul.mubr.msk.bf16.vlgmr.msra.gmra.mrb[20].mxu1 %vm522_vm3, %v1347_v55  ;;  %v1425_v55 = vld [vmem:[%s1817_s5] sm:$0xff]  }
 0x2bc   : > { %v567_v60 = vpop.f32.mrb[4].mxu1 }
 0x2bd   : > { %v618_v61 = vadd.f32 %v617_v56, %v567_v60  ;;  %v569_v62 = vpop.f32.mrb[5].mxu1  ;;  %v1426_v56 = vld [vmem:[%s1820_s8] sm:$0xff]  }
 0x2be   : > { %v620_v63 = vadd.f32 %v619_v57, %v569_v62  ;;  %v571_v1 = vpop.f32.mrb[6].mxu1  ;;  %v1097_v57 = vpop.permute.xlu0 %1096 }
 0x2bf   : > { %v572_v2 = vpop.f32.mrb[7].mxu1 }
 0x2c0   : > { %v749_v5 = vpop.f32.mrb[4].mxu0 }
 0x2c1   : > { %v751_v6 = vpop.f32.mrb[5].mxu0 }
 0x2c2   : > { %v753_v7 = vpop.f32.mrb[6].mxu0 }
 0x2c3   : > { %v754_v8 = vpop.f32.mrb[7].mxu0 }
 0x2c4   : > { %v685_v9 = vpop.f32.mrb[8].mxu1 }
 0x2c5   : > { %v692_v10 = vadd.f32 %v685_v9, %v618_v61  ;;  %v687_v11 = vpop.f32.mrb[9].mxu1 }
 0x2c6   : > { %v693_v12 = vadd.f32 %v687_v11, %v620_v63  ;;  %v689_v13 = vpop.f32.mrb[10].mxu1 }
 0x2c7   : > { %v756_v14 = vadd.f32 %v749_v5, %v692_v10  ;;  %v690_v15 = vpop.f32.mrb[11].mxu1 }
 0x2c8   : > { %v757_v16 = vadd.f32 %v751_v6, %v693_v12  ;;  %v877_v17 = vpop.f32.mrb[8].mxu0 }
 0x2c9   : > { %v879_v18 = vpop.f32.mrb[9].mxu0 }
 0x2ca   : > { %v881_v19 = vpop.f32.mrb[10].mxu0 }
 0x2cb   : > { %v882_v20 = vpop.f32.mrb[11].mxu0 }
 0x2cc   : > { %v813_v21 = vpop.f32.mrb[12].mxu1 }
 0x2cd   : > { %v820_v22 = vadd.f32 %v813_v21, %v756_v14  ;;  %v815_v23 = vpop.f32.mrb[13].mxu1 }
 0x2ce   : > { %v821_v24 = vadd.f32 %v815_v23, %v757_v16  ;;  %v817_v27 = vpop.f32.mrb[14].mxu1 }
 0x2cf   : > { %v884_v28 = vadd.f32 %v877_v17, %v820_v22  ;;  %v818_v29 = vpop.f32.mrb[15].mxu1 }
 0x2d0   : > { %v885_v30 = vadd.f32 %v879_v18, %v821_v24  ;;  %v1005_v31 = vpop.f32.mrb[12].mxu0 }
 0x2d1   : > { %v1007_v32 = vpop.f32.mrb[13].mxu0 }
 0x2d2   : > { %v1009_v33 = vpop.f32.mrb[14].mxu0 }
 0x2d3   : > { %v1010_v34 = vpop.f32.mrb[15].mxu0 }
 0x2d4   : > { %v941_v35 = vpop.f32.mrb[16].mxu1 }
 0x2d5   : > { %v948_v36 = vadd.f32 %v941_v35, %v884_v28  ;;  %v943_v37 = vpop.f32.mrb[17].mxu1 }
 0x2d6   : > { %v949_v40 = vadd.f32 %v943_v37, %v885_v30  ;;  %v945_v41 = vpop.f32.mrb[18].mxu1 }
 0x2d7   : > { %v1012_v25 = vadd.f32 %v1005_v31, %v948_v36  ;;  %v946_v26 = vpop.f32.mrb[19].mxu1 }
 0x2d8   : > { %v1013_v42 = vadd.f32 %v1007_v32, %v949_v40 }
 0x2dc   : > { %v1069_v43 = vpop.f32.mrb[20].mxu1 }
 0x2dd   : > { %v1076_v44 = vadd.f32 %v1069_v43, %v1012_v25  ;;  %v1071_v45 = vpop.f32.mrb[21].mxu1 }
 0x2de   : > { %v1077_v47 = vadd.f32 %v1071_v45, %v1013_v42  ;;  %v1073_v48 = vpop.f32.mrb[22].mxu1 }
 0x2df   : > { %v1084_v39 = vadd.f32 %v1082_v46, %v1076_v44  ;;  %v1074_v49 = vpop.f32.mrb[23].mxu1 }
 0x2e0   : > { %v1085_v50 = vadd.f32 %v1082_v46, %v1077_v47 }
 0x2e1   : > { %v1086_v51 = vmax.f32 %v1084_v39, 0.0 }
 0x2e2   : > { %v1087_v52 = vmax.f32 %v1085_v50, 0.0 }
 0x2e3   : > { %v1088_v53 = vpack.c.bf16 %v1086_v51, %v1086_v51 }
 0x2e4   : > { %v1089_v38 = vpack.c.bf16 %v1087_v52, %v1087_v52 }
 0x2e5   : > { %v1113_v54 = vsel %vm526_vm2, %v1088_v53, 0 }
 0x2e6   : > { %1351 = vmatprep.subr.msk.bf16.mxu0 %vm526_vm2, %v1089_v38 }
 0x2e7   : > { %1119 = vmatpush1.bf16.msra.mxu0 %v1113_v54 }
 0x2e8   : > { %1354 = vmatprep.subr.msk.bf16.mxu0 %vm353_vm0, %v1609_v3  ;;  %v1102_v3 = vpop.permute.xlu1 %1101 }
 0x2ea   : > { %1352 = vmatmul.mubr.msk.bf16.vlgmr.msra.gmra.mrb[16].mxu0 %vm522_vm3, %v1425_v55 }
 0x2eb   : > { %1172 = vmatpush1.bf16.msra.mxu0 %v1612_v4  ;;  %1203 = vmatprep.mubr.bf16.mxu0 %v1491_v0 }
 0x2f6   : > { %1355 = vmatmul.mubr.msk.bf16.vlgmr.msra.gmra.mrb[16].mxu0 %vm349_vm1, %v1426_v56 }
 0x3c9   : > { %v1205_v58 = vpop.f32.mrb[16].mxu0 }
 0x3ca   : > { %v1367_v59 = vadd.f32 %v1205_v58, %v1097_v57  ;;  %v1207_v60 = vpop.f32.mrb[17].mxu0 }
 0x3cb   : > { %v1368_v61 = vadd.f32 %v1207_v60, %v1097_v57  ;;  %v1209_v62 = vpop.f32.mrb[18].mxu0 }
 0x3cc   : > { %v1218_v63 = vmax.f32 %v1367_v59, 0.0  ;;  %v1369_v4 = vadd.f32 %v1209_v62, %v1102_v3  ;;  %v1211_v1 = vpop.f32.mrb[19].mxu0 }
 0x3cd   : > { %v1219_v0 = vmax.f32 %v1368_v61, 0.0  ;;  %v1370_v2 = vadd.f32 %v1211_v1, %v1102_v3 }
 0x3ce   : > { %v1220_v5 = vmax.f32 %v1369_v4, 0.0 }
 0x3cf   : > { %v1364_v6 = vpack.c.bf16 %v1219_v0, %v1218_v63  ;;  %v1221_v7 = vmax.f32 %v1370_v2, 0.0 }
 0x3d1   : > { %1234 = vst [vmem:[%s325_s14] sm:$0xff] %v1364_v6  ;;  %v1365_v8 = vpack.c.bf16 %v1221_v7, %v1220_v5 }
 0x3d3   : > { %1235 = vst [vmem:[%s325_s14 + $0x8] sm:$0xff] %v1365_v8 }
 0x3d4   : > { %1440 = shalt.err (!%p1437_p3)
}
 0x3d5   : > { %s1441_s28 = scalar_lea.hbm %s1769_s23, 256  ;;  %s1445_s17 = scalar_lea.hbm %s1821_s9, 512 }
 0x3d6   : > { %p1442_p4 = scmp.ne.s32.totalorder %s1769_s23, %s1441_s28  ;;  %p1446_p9 = scmp.lt.u32.totalorder %s1769_s23, %s1821_s9 }
 0x3d7   : > { %p1447_p10 = scmp.lt.u32.totalorder %s1445_s17, %s1441_s28  ;;  %p1449_p12 = scmp.lt.u32.totalorder %s1441_s28, %s1769_s23 }
 0x3d8   : > { %p1443_p7 = pnand %p1442_p4, %p1587_p5 }
 0x3d9   : > { %p1448_p11 = por %p1447_p10, %p1446_p9 }
 0x3da   : > { %p1444_p8 = pneg %p1443_p7 }
 0x3db   : > { %p1450_p13 = por %p1449_p12, %p1448_p11 }
 0x3dd   : > { %p1451_p0 = pnand %p1450_p13, %p1444_p8 }
 0x3df   : > { %1454 = shalt.err (!%p1451_p0)
}
 0x3e0   : > { %s1497_s25 = smov 128   ;;  %s1498_s13 = smov 8  }
 0x3e1   : > { %1375 = dma.vmem_to_hbm [thread:$0]  (%p1587_p5), %s1764_s16, 256, %s1769_s23, %s1771_s24, %s1497_s25, %s1497_s25, %s1498_s13  }
 0x3e2 PF: > { %p1381_p1 = scmp.ge.s32.totalorder %s1489_s12, 2  ;;  %s1265_s26 = sand.u32 1, %s1477_s30  }
 0x3e3   : > { %s1266_s27 = scalar_lea.sflag [#allocation3], %s1265_s26 }
 0x3e4   : > { %p1378_p2 = pnand %p1381_p1, %p1591_p6 }
 0x3e6   : > { %1472 = dma.done.wait (!%p1378_p2), %s1266_s27, 256  }
 0x3e7   : > { %1474 = vsyncadd (!%p1378_p2), %s1266_s27, 4294967040  ;;  %p19_p3 = scmp.ge.s32.totalorder %s1574_s15, 4   ;;  %s1824_s30 = smov %s1481_s10 }
 0x3e8   : > { %s1825_s10 = smov %s1485_s11  ;;  %s1826_s11 = smov %s1585_s18 }
 0x3e9   : > { %s1827_s12 = smov %s1574_s15  ;;  %21 = sbr.rel (!%p19_p3) target bundleno = 3 (0x3), region = 99 }
 0x3f0   :  { %1271 = vsyncpa [#allocation3], 1 }
 0x3f1   :  { %1273 = vsyncpa [#allocation3 + $0x1], 1 }

</bundles_post_ra>
